<compile_context>
chip_gen: v7x
topology: tpu7x:2x2x1
jax: 0.10.0
libtpu: 0.0.40
codegen_flags: <defaults>
</compile_context>

<pallas_src>
import functools

import numpy as np
import jax
import jax.numpy as jnp
from jax.experimental import pallas as pl
from jax.experimental.pallas import tpu as pltpu


# ----------------------------------------------------------------------------
# Kernel: one fused  y = relu(x @ W + b)  tile (W pre-packed bf16, lane-padded)
# ----------------------------------------------------------------------------
def _linbndrop_kernel(x_ref, w_ref, b_ref, o_ref, *, act):
    x = x_ref[...].astype(jnp.bfloat16)                               # bf16 MXU operand
    y = jnp.dot(x, w_ref[...], preferred_element_type=jnp.float32)    # f32 accumulate
    y = y + b_ref[...]                                                # f32 epilogue (v5e-safe)
    if act:
        y = jnp.maximum(y, 0.0)
    o_ref[...] = y                                                    # unmasked lane-dense store


# ----------------------------------------------------------------------------
# Host-side one-time packing: BN fold, transpose, bf16 cast, lane padding.
# ----------------------------------------------------------------------------
def prepare_params(weight, bias, *, bn=None, eps=1e-5):
    """weight: (n_out, n_in) torch nn.Linear layout; bias: (n_out,).
    bn: optional dict(gamma, beta, mean, var) for nn.BatchNorm1d(n_in) in eval mode."""
    n_out, n_in = weight.shape
    w = jnp.asarray(weight, jnp.float32).T          # (n_in, n_out)
    b = jnp.asarray(bias, jnp.float32)
    if bn is not None:
        # eval-mode BN on the INPUT folds exactly into the linear layer:
        #   ((x - mean) * rsqrt(var+eps) * gamma + beta) @ W + b
        # =  x @ (scale[:, None] * W) + (shift @ W + b)
        scale = bn["gamma"] / jnp.sqrt(bn["var"] + eps)
        shift = bn["beta"] - bn["mean"] * scale
        b = b + shift @ w
        w = scale[:, None] * w
    # TODO(synk): training-mode dropout / batch-statistic BN are not implemented
    # (inference semantics only; the module defaults are dropout=0.0, bn=False anyway).
    n_out_pad = ((n_out + 127) // 128) * 128        # lane-dense output -> unmasked vst
    if n_out_pad != n_out:
        w = jnp.pad(w, ((0, 0), (0, n_out_pad - n_out)))
        b = jnp.pad(b, (0, n_out_pad - n_out))
    return w.astype(jnp.bfloat16), b.reshape(1, n_out_pad)


# ----------------------------------------------------------------------------
# Forward wrapper
# ----------------------------------------------------------------------------
def linbndrop_forward(x, w_packed, b_packed, *, n_out, act=True):
    M, n_in = x.shape
    n_out_pad = w_packed.shape[1]

    # Row tiling: one gridless block when M is small (this workload is latency-bound,
    # a grid is pure overhead); 8-aligned row tiles for large M so the "parallel" grid
    # axis can be split across TensorCores (v7x has two per chip).
    tile_candidates = [t for t in (512, 256, 128, 64, 32, 16, 8) if M % t == 0]
    tm = M if (M <= 512 or not tile_candidates) else tile_candidates[0]
    grid = (M // tm,)

    out = pl.pallas_call(
        functools.partial(_linbndrop_kernel, act=act),
        out_shape=jax.ShapeDtypeStruct((M, n_out_pad), jnp.float32),
        grid=grid,
        in_specs=[
            pl.BlockSpec((tm, n_in), lambda i: (i, 0)),          # activations (row-tiled)
            pl.BlockSpec((n_in, n_out_pad), lambda i: (0, 0)),   # packed bf16 weight
            pl.BlockSpec((1, n_out_pad), lambda i: (0, 0)),      # f32 bias row
        ],
        out_specs=pl.BlockSpec((tm, n_out_pad), lambda i: (i, 0)),
        compiler_params=pltpu.CompilerParams(
            dimension_semantics=("parallel",)),
    )(x, w_packed, b_packed)
    return out[:, :n_out] if n_out != n_out_pad else out


# ----------------------------------------------------------------------------
if __name__ == "__main__":
    # LinBnDrop(n_in=8, n_out=16) with module defaults: dropout=0.0, bn=False, act=True.
    B, n_in, n_out = 2, 8, 16

    key = jax.random.PRNGKey(0)
    kx, kw, kb = jax.random.split(key, 3)
    x = jax.random.normal(kx, (B, n_in), jnp.float32)
    weight = jax.random.normal(kw, (n_out, n_in), jnp.float32) / np.sqrt(n_in)  # torch layout
    bias = 0.01 * jax.random.normal(kb, (n_out,), jnp.float32)

    # One-time host-side packing (kept outside the jitted per-call forward).
    w_packed, b_packed = prepare_params(weight, bias, bn=None)

    fwd = jax.jit(functools.partial(linbndrop_forward, n_out=n_out, act=True))
    out = jax.block_until_ready(fwd(x, w_packed, b_packed))

    # Pure-JAX f32 reference of the module's forward (Linear + ReLU).
    ref = jnp.maximum(x @ weight.T + bias, 0.0)
    assert out.shape == (B, n_out) and out.dtype == jnp.float32
    np.testing.assert_allclose(np.asarray(out), np.asarray(ref), rtol=3e-2, atol=3e-2)
    print("KERNEL_OK")
</pallas_src>

<mosaic_0001>
module attributes {stable_mosaic.version = 11 : i64} {
  func.func @_linbndrop_kernel(%arg0: i32, %arg1: memref<2x8xf32, #tpu.memory_space<vmem>>, %arg2: memref<8x128xbf16, #tpu.memory_space<vmem>>, %arg3: memref<1x128xf32, #tpu.memory_space<vmem>>, %arg4: memref<2x128xf32, #tpu.memory_space<vmem>>) attributes {dimension_semantics = [#tpu.dimension_semantics<parallel>], iteration_bounds = array<i64: 1>, scalar_prefetch = 0 : i64, scratch_operands = 0 : i64, tpu.core_type = #tpu.core_type<tc>, window_params = [{transform_indices = @transform_0, window_bounds = array<i64: 2, 8>}, {pipeline_mode = #tpu.pipeline_mode<synchronous>, transform_indices = @transform_1, window_bounds = array<i64: 8, 128>}, {pipeline_mode = #tpu.pipeline_mode<synchronous>, transform_indices = @transform_2, window_bounds = array<i64: 1, 128>}, {transform_indices = @transform_3, window_bounds = array<i64: 2, 128>}]} {
    %c0 = arith.constant 0 : index
    %c0_0 = arith.constant 0 : index
    %0 = vector.load %arg1[%c0, %c0_0] : memref<2x8xf32, #tpu.memory_space<vmem>>, vector<2x8xf32>
    %1 = arith.truncf %0 : vector<2x8xf32> to vector<2x8xbf16>
    %c0_1 = arith.constant 0 : index
    %c0_2 = arith.constant 0 : index
    %2 = vector.load %arg2[%c0_1, %c0_2] : memref<8x128xbf16, #tpu.memory_space<vmem>>, vector<8x128xbf16>
    %cst = arith.constant dense<0.000000e+00> : vector<2x128xf32>
    %3 = tpu.matmul %1, %2, %cst {dimension_numbers = #tpu.dot_dimension_numbers<[1], [0], [0], [1], [0, 0, 1, 1], [], []>} : vector<2x8xbf16>, vector<8x128xbf16>, vector<2x128xf32> -> vector<2x128xf32>
    %c0_3 = arith.constant 0 : index
    %c0_4 = arith.constant 0 : index
    %4 = vector.load %arg3[%c0_3, %c0_4] : memref<1x128xf32, #tpu.memory_space<vmem>>, vector<1x128xf32>
    %5 = vector.broadcast %4 : vector<1x128xf32> to vector<2x128xf32>
    %6 = arith.addf %3, %5 : vector<2x128xf32>
    %cst_5 = arith.constant 0.000000e+00 : f32
    %7 = vector.broadcast %cst_5 : f32 to vector<2x128xf32>
    %8 = arith.maximumf %6, %7 : vector<2x128xf32>
    %c0_6 = arith.constant 0 : index
    %c0_7 = arith.constant 0 : index
    %9 = vector.load %arg4[%c0_6, %c0_7] : memref<2x128xf32, #tpu.memory_space<vmem>>, vector<2x128xf32>
    tpu.vector_store %arg4[%c0_6, %c0_7], %8 {strides = array<i32>} : memref<2x128xf32, #tpu.memory_space<vmem>>, vector<2x128xf32>,
    return
  }
  func.func @transform_0(%arg0: i32) -> (i32, i32) {
    %c0_i32 = arith.constant 0 : i32
    %c0_i32_0 = arith.constant 0 : i32
    return %arg0, %c0_i32 : i32, i32
  }
  func.func @transform_1(%arg0: i32) -> (i32, i32) {
    %c0_i32 = arith.constant 0 : i32
    %c0_i32_0 = arith.constant 0 : i32
    %c0_i32_1 = arith.constant 0 : i32
    return %c0_i32, %c0_i32_0 : i32, i32
  }
  func.func @transform_2(%arg0: i32) -> (i32, i32) {
    %c0_i32 = arith.constant 0 : i32
    %c0_i32_0 = arith.constant 0 : i32
    %c0_i32_1 = arith.constant 0 : i32
    return %c0_i32, %c0_i32_0 : i32, i32
  }
  func.func @transform_3(%arg0: i32) -> (i32, i32) {
    %c0_i32 = arith.constant 0 : i32
    %c0_i32_0 = arith.constant 0 : i32
    return %arg0, %c0_i32 : i32, i32
  }
}

</mosaic_0001>

<bundles_post_ra>
// kernel: linbndrop_forward.1
= control target key start
LH: loop header
LB: loop body
LE: loop exit
PB: predicated region body
PF: predicated region fallthrough
CT: control target
= control target key end

     0   :  { %8 = vsyncpa [#allocation3], 0  ;;  %s267_s0 = inlined_call_operand.hbm [shape: f32[2,8], index: 0, kind: input, shape index: {}]   ;;  %s268_s1 = inlined_call_operand.hbm [shape: bf16[8,128], index: 1, kind: input, shape index: {}]   ;;  %s269_s2 = inlined_call_operand.vmem [shape: f32[1,128], index: 2, kind: input, shape index: {}]   ;;  %s270_s3 = inlined_call_operand.hbm [shape: f32[2,128], index: 3, kind: output, shape index: {}]  }
   0x1   :  { %9 = vsyncpa [#allocation6], 0 }
   0x2   :  { %10 = vsyncpa [#allocation4], 0  ;;  %s203_s12 = smov [#allocation2]   ;;  %s204_s14 = smov [#allocation5]  }
   0x3   :  { %s17_s13 = sshll.u32 %s203_s12, 4  ;;  %s27_s15 = sshll.u32 %s204_s14, 4  ;;  %s18_s13 = int_to_ptr.vmem [resolvable:$true] %s17_s13  ;;  %s28_s15 = int_to_ptr.vmem [resolvable:$true] %s27_s15 }
   0x4   :  { %s131_s18 = scalar_lea.hbm %s267_s0, 32 }
   0x5   :  { %p132_p0 = scmp.ne.s32.totalorder %s267_s0, %s131_s18  ;;  %p135_p1 = scmp.lt.u32.totalorder %s131_s18, %s267_s0 }
   0x7   :  { %p137_p2 = pnand %p135_p1, %p132_p0 }
   0x9   :  { %140 = shalt.err (!%p137_p2)
}
   0xa   :  { %s141_s23 = scalar_lea.vmem %s18_s13, 32  ;;  %p146_p4 = scmp.lt.s32.totalorder %s18_s13, %s18_s13 }
   0xb   :  { %p142_p3 = scmp.ne.s32.totalorder %s18_s13, %s141_s23  ;;  %p147_p5 = scmp.lt.s32.totalorder %s141_s23, %s141_s23 }
   0xd   :  { %p148_p6 = por %p147_p5, %p146_p4 }
   0xf   :  { %p149_p7 = pnand %p148_p6, %p142_p3 }
  0x11   :  { %152 = shalt.err (!%p149_p7)
}
  0x12   :  { %20 = dma.hbm_to_vmem [thread:$0]  %s267_s0, 32, %s18_s13, [#allocation3]  }
  0x13   :  { %s153_s28 = scalar_lea.hbm %s268_s1, 64 }
  0x14   :  { %p154_p8 = scmp.ne.s32.totalorder %s268_s1, %s153_s28  ;;  %p157_p9 = scmp.lt.u32.totalorder %s153_s28, %s268_s1 }
  0x16   :  { %p159_p10 = pnand %p157_p9, %p154_p8 }
  0x18   :  { %162 = shalt.err (!%p159_p10)
}
  0x19   :  { %s163_s6 = scalar_lea.vmem %s28_s15, 64  ;;  %p168_p12 = scmp.lt.s32.totalorder %s28_s15, %s28_s15 }
  0x1a   :  { %p164_p11 = scmp.ne.s32.totalorder %s28_s15, %s163_s6  ;;  %p169_p13 = scmp.lt.s32.totalorder %s163_s6, %s163_s6 }
  0x1c   :  { %p170_p0 = por %p169_p13, %p168_p12 }
  0x1e   :  { %p171_p1 = pnand %p170_p0, %p164_p11 }
  0x20   :  { %174 = shalt.err (!%p171_p1)
}
  0x21   :  { %30 = dma.hbm_to_vmem [thread:$0]  %s268_s1, 64, %s28_s15, [#allocation6]  }
  0x22   :  { %197 = dma.done.wait [#allocation3], 32  }
  0x23   :  { %198 = vsyncadd [#allocation3], 4294967264 }
  0x24   :  { %199 = dma.done.wait [#allocation6], 64  }
  0x25   :  { %200 = vsyncadd [#allocation6], 4294967232  ;;  %v205_v0 = vmov 0.0   ;;  %vm206_vm0 = vmmov 0   ;;  %vm54_vm1 = vcmask 1043456   ;;  %vm50_vm2 = vcmask 64512  }
  0x26   :  { %120 = vmatprep.subr.bf16.mxu0 %v205_v0  ;;  %122 = vmatprep.mubr.msk.bf16.mxu0 %vm206_vm0, %v205_v0  ;;  %v42_v1 = vld [vmem:[#allocation5] sm:$0xf]  ;;  %v40_v2 = vld [vmem:[#allocation2] sm:$0x3]  ;;  %s207_s1 = smov [#allocation7]  }
  0x27   :  { %v56_v3 = vsel %vm54_vm1, %v42_v1, 0  ;;  %v41_v4 = vpack.c.bf16 %v40_v2, %v40_v2  ;;  %v116_v5 = vld [vmem:[%s269_s2] ss:$0 sm:$0xff]  ;;  %s106_s10 = sshll.u32 %s207_s1, 4  ;;  %s107_s10 = int_to_ptr.vmem [resolvable:$true] %s106_s10 }
  0x28   :  { %121 = vmatpush3.bf16.msra.mxu0 %v56_v3  ;;  %s175_s11 = scalar_lea.vmem %s107_s10, 32  ;;  %p180_p3 = scmp.lt.s32.totalorder %s107_s10, %s107_s10 }
  0x29   :  { %p176_p2 = scmp.ne.s32.totalorder %s107_s10, %s175_s11  ;;  %p181_p4 = scmp.lt.s32.totalorder %s175_s11, %s175_s11 }
  0x2b   :  { %123 = vmatmul.mubr.msk.bf16.vlgmr.msra.gmra.mrb[0].mxu0 %vm50_vm2, %v41_v4  ;;  %p182_p5 = por %p181_p4, %p180_p3 }
  0x2d   :  { %p183_p6 = pnand %p182_p5, %p176_p2 }
  0xfe   :  { %v92_v6 = vpop.f32.mrb[0].mxu0 }
  0xff   :  { %v93_v7 = vadd.f32 %v116_v5, %v92_v6  ;;  %v124_v8 = vpop.f32.mrb[1].mxu0 }
 0x100   :  { %v95_v9 = vpop.f32.mrb[2].mxu0 }
 0x101   :  { %v98_v10 = vmax.f32 %v93_v7, 0.0  ;;  %v125_v11 = vpop.f32.mrb[3].mxu0 }
 0x103   :  { %99 = vst [vmem:[#allocation7] sm:$0x3] %v98_v10 }
 0x104   :  { %186 = shalt.err (!%p183_p6)
}
 0x105   :  { %s187_s2 = scalar_lea.hbm %s270_s3, 32 }
 0x106   :  { %p188_p7 = scmp.ne.s32.totalorder %s270_s3, %s187_s2  ;;  %p191_p8 = scmp.lt.u32.totalorder %s187_s2, %s270_s3 }
 0x108   :  { %p193_p9 = pnand %p191_p8, %p188_p7 }
 0x10a   :  { %196 = shalt.err (!%p193_p9)
}
 0x10b   :  { %109 = dma.vmem_to_hbm [thread:$0]  %s107_s10, 32, %s270_s3, [#allocation4]  }
 0x10c   :  { %201 = dma.done.wait [#allocation4], 32  }
 0x10d   :  { %202 = vsyncadd [#allocation4], 4294967264 }
 0x10e   :  { %113 = vsyncpa [#allocation3], 1 }
 0x10f   :  { %114 = vsyncpa [#allocation6], 1 }
 0x110   :  { %115 = vsyncpa [#allocation4], 1 }

</bundles_post_ra>
